<compile_context>
chip_gen: v7x
topology: tpu7x:2x2x1
jax: 0.10.0
libtpu: 0.0.40
codegen_flags: <defaults>
</compile_context>

<pallas_src>
import jax
import jax.numpy as jnp
from jax.experimental import pallas as pl
from jax.experimental.pallas import tpu as pltpu

NUM_BOARD_VALUES = 11
STATE_DIM = 7
IN_DIM = STATE_DIM ** 2 * NUM_BOARD_VALUES   # 539
HIDDEN = 256
MAX_TILE = 512       # rows per batch tile; (512 x 640-lane f32) x 2 buffers ~ 2.6 MiB VMEM


def critic_kernel(x_ref, w1_ref, b1_ref, w2_ref, b2_ref, o_ref):
    # x_ref : (TB, 539)   f32   -- pipelined per batch tile
    # w1_ref: (539, 256)  bf16  -- VMEM resident (constant index_map)
    # b1_ref: (1, 256)    f32   -- VMEM resident
    # w2_ref: (1, 256)    f32   (fc2 weight as a row) -- VMEM resident
    # b2_ref: (1, 1)      f32   -- SMEM scalar
    # o_ref : (TB, 1)     f32
    x = x_ref[...].astype(jnp.bfloat16)                       # cast on VPU (cheap)
    # fc1 on the MXU: bf16 operands, f32 accumulation.
    h = jnp.dot(x, w1_ref[...], preferred_element_type=jnp.float32)
    h = jnp.maximum(h + b1_ref[...], 0.0)                     # bias + ReLU (VPU)
    # fc2 (output width 1): multiply + lane reduction on VPU/XLU instead of MXU.
    o_ref[...] = (jnp.sum(h * w2_ref[...], axis=-1, keepdims=True) + b2_ref[0, 0])


def prepare_params(w1, b1, w2, b2):
    """One-time parameter prep: fc1 weight cast to bf16, fc2 weight as a row."""
    w1_p = w1.reshape(IN_DIM, HIDDEN).astype(jnp.bfloat16)
    b1_p = b1.reshape(1, HIDDEN).astype(jnp.float32)
    w2_row = w2.reshape(HIDDEN, 1).T.astype(jnp.float32)       # (256,1) -> (1,256)
    b2_s = b2.reshape(1, 1).astype(jnp.float32)
    return w1_p, b1_p, w2_row, b2_s


def critic_forward(x, params):
    """x: (B, 7, 7, 11) or (B, 539), any float dtype. Returns (B, 1) float32."""
    w1_p, b1_p, w2_row, b2_s = params

    x = x.reshape(-1, IN_DIM).astype(jnp.float32)    # reshape is free (contiguous)
    B = x.shape[0]
    # Whole batch in one tile when it fits (block dim == full dim is always legal);
    # otherwise 512-row tiles with a Pallas-padded tail block.
    tb = B if B <= MAX_TILE else MAX_TILE
    grid = (pl.cdiv(B, tb),)

    out = pl.pallas_call(
        critic_kernel,
        out_shape=jax.ShapeDtypeStruct((B, 1), jnp.float32),
        grid=grid,
        in_specs=[
            pl.BlockSpec((tb, IN_DIM), lambda i: (i, 0)),       # x tiles (pipelined)
            pl.BlockSpec((IN_DIM, HIDDEN), lambda i: (0, 0)),   # w1 resident
            pl.BlockSpec((1, HIDDEN), lambda i: (0, 0)),        # b1 resident
            pl.BlockSpec((1, HIDDEN), lambda i: (0, 0)),        # w2 row resident
            pl.BlockSpec(memory_space=pltpu.MemorySpace.SMEM),  # b2 scalar
        ],
        out_specs=pl.BlockSpec((tb, 1), lambda i: (i, 0)),
        compiler_params=pltpu.CompilerParams(
            dimension_semantics=("parallel",),   # shard batch tiles across TCs (v7x)
        ),
        cost_estimate=pl.CostEstimate(
            flops=2 * B * IN_DIM * HIDDEN + 2 * B * HIDDEN,
            transcendentals=0,
            bytes_accessed=(B * IN_DIM * 4 + IN_DIM * HIDDEN * 2
                            + 2 * HIDDEN * 4 + 4 + B * 4),
        ),
    )(x, w1_p, b1_p, w2_row, b2_s)

    return out


def init_params(key):
    """Mimics PyTorch default Linear init (uniform +/- 1/sqrt(fan_in)).
    Weights stored pre-transposed as (in, out)."""
    k1, k2, k3, k4 = jax.random.split(key, 4)
    bound1 = 1.0 / jnp.sqrt(float(IN_DIM))
    bound2 = 1.0 / jnp.sqrt(float(HIDDEN))
    w1 = jax.random.uniform(k1, (IN_DIM, HIDDEN), jnp.float32, -bound1, bound1)
    b1 = jax.random.uniform(k2, (1, HIDDEN), jnp.float32, -bound1, bound1)
    w2 = jax.random.uniform(k3, (HIDDEN, 1), jnp.float32, -bound2, bound2)
    b2 = jax.random.uniform(k4, (1, 1), jnp.float32, -bound2, bound2)
    return w1, b1, w2, b2


if __name__ == "__main__":
    key = jax.random.PRNGKey(0)
    k_x, k_p = jax.random.split(key)

    w1, b1, w2, b2 = init_params(k_p)
    params = prepare_params(w1, b1, w2, b2)

    def reference(xin):
        xf = xin.reshape(-1, IN_DIM).astype(jnp.float32)
        return jnp.maximum(xf @ w1 + b1, 0.0) @ w2 + b2

    # Small batch: single grid step, block dims equal full array dims.
    B = 2
    x = jax.random.uniform(k_x, (B, STATE_DIM, STATE_DIM, NUM_BOARD_VALUES),
                           jnp.float32)
    out = jax.block_until_ready(critic_forward(x, params))
    ref = reference(x)
    assert out.shape == (B, 1), out.shape
    # fc1 runs in bf16 with f32 accumulation -> compare against f32 ref loosely.
    assert jnp.allclose(out, ref, atol=2e-2, rtol=2e-2), (out, ref)

    # Larger batch: exercises multi-step grid + Pallas tail padding (600 rows).
    B2 = 600
    x2 = jax.random.uniform(jax.random.PRNGKey(1),
                            (B2, STATE_DIM, STATE_DIM, NUM_BOARD_VALUES),
                            jnp.float32)
    out2 = jax.block_until_ready(critic_forward(x2, params))
    ref2 = reference(x2)
    assert out2.shape == (B2, 1), out2.shape
    assert jnp.allclose(out2, ref2, atol=2e-2, rtol=2e-2)

    print("KERNEL_OK")
</pallas_src>

<mosaic_0001>
module attributes {stable_mosaic.version = 11 : i64} {
  func.func @critic_kernel(%arg0: i32, %arg1: memref<2x539xf32, #tpu.memory_space<vmem>>, %arg2: memref<539x256xbf16, #tpu.memory_space<vmem>>, %arg3: memref<1x256xf32, #tpu.memory_space<vmem>>, %arg4: memref<1x256xf32, #tpu.memory_space<vmem>>, %arg5: memref<1x1xf32, #tpu.memory_space<smem>>, %arg6: memref<2x1xf32, #tpu.memory_space<vmem>>) attributes {dimension_semantics = [#tpu.dimension_semantics<parallel>], iteration_bounds = array<i64: 1>, scalar_prefetch = 0 : i64, scratch_operands = 0 : i64, tpu.core_type = #tpu.core_type<tc>, window_params = [{transform_indices = @transform_0, window_bounds = array<i64: 2, 539>}, {pipeline_mode = #tpu.pipeline_mode<synchronous>, transform_indices = @transform_1, window_bounds = array<i64: 539, 256>}, {pipeline_mode = #tpu.pipeline_mode<synchronous>, transform_indices = @transform_2, window_bounds = array<i64: 1, 256>}, {pipeline_mode = #tpu.pipeline_mode<synchronous>, transform_indices = @transform_3, window_bounds = array<i64: 1, 256>}, {transform_indices = @transform_4, window_bounds = array<i64: 1, 1>}, {transform_indices = @transform_5, window_bounds = array<i64: 2, 1>}]} {
    %c0 = arith.constant 0 : index
    %c0_0 = arith.constant 0 : index
    %0 = vector.load %arg1[%c0, %c0_0] : memref<2x539xf32, #tpu.memory_space<vmem>>, vector<2x539xf32>
    %1 = arith.truncf %0 : vector<2x539xf32> to vector<2x539xbf16>
    %c0_1 = arith.constant 0 : index
    %c0_2 = arith.constant 0 : index
    %2 = vector.load %arg2[%c0_1, %c0_2] : memref<539x256xbf16, #tpu.memory_space<vmem>>, vector<539x256xbf16>
    %cst = arith.constant dense<0.000000e+00> : vector<2x256xf32>
    %3 = tpu.matmul %1, %2, %cst {dimension_numbers = #tpu.dot_dimension_numbers<[1], [0], [0], [1], [0, 0, 1, 1], [], []>} : vector<2x539xbf16>, vector<539x256xbf16>, vector<2x256xf32> -> vector<2x256xf32>
    %c0_3 = arith.constant 0 : index
    %c0_4 = arith.constant 0 : index
    %4 = vector.load %arg3[%c0_3, %c0_4] : memref<1x256xf32, #tpu.memory_space<vmem>>, vector<1x256xf32>
    %5 = vector.broadcast %4 : vector<1x256xf32> to vector<2x256xf32>
    %6 = arith.addf %3, %5 : vector<2x256xf32>
    %cst_5 = arith.constant 0.000000e+00 : f32
    %7 = vector.broadcast %cst_5 : f32 to vector<2x256xf32>
    %8 = arith.maximumf %6, %7 : vector<2x256xf32>
    %c0_6 = arith.constant 0 : index
    %c0_7 = arith.constant 0 : index
    %9 = vector.load %arg4[%c0_6, %c0_7] : memref<1x256xf32, #tpu.memory_space<vmem>>, vector<1x256xf32>
    %10 = vector.broadcast %9 : vector<1x256xf32> to vector<2x256xf32>
    %11 = arith.mulf %8, %10 : vector<2x256xf32>
    %cst_8 = arith.constant dense<0.000000e+00> : vector<2xf32>
    %12 = vector.multi_reduction <add>, %11, %cst_8 [1] : vector<2x256xf32> to vector<2xf32>
    %13 = vector.shape_cast %12 : vector<2xf32> to vector<2x1xf32>
    %c0_9 = arith.constant 0 : index
    %c0_10 = arith.constant 0 : index
    %14 = memref.load %arg5[%c0_9, %c0_10] : memref<1x1xf32, #tpu.memory_space<smem>>
    %15 = vector.broadcast %14 : f32 to vector<2x1xf32>
    %16 = arith.addf %13, %15 : vector<2x1xf32>
    %c0_11 = arith.constant 0 : index
    %c0_12 = arith.constant 0 : index
    %17 = vector.load %arg6[%c0_11, %c0_12] : memref<2x1xf32, #tpu.memory_space<vmem>>, vector<2x1xf32>
    tpu.vector_store %arg6[%c0_11, %c0_12], %16 {strides = array<i32>} : memref<2x1xf32, #tpu.memory_space<vmem>>, vector<2x1xf32>,
    return
  }
  func.func @transform_0(%arg0: i32) -> (i32, i32) {
    %c0_i32 = arith.constant 0 : i32
    %c0_i32_0 = arith.constant 0 : i32
    return %arg0, %c0_i32 : i32, i32
  }
  func.func @transform_1(%arg0: i32) -> (i32, i32) {
    %c0_i32 = arith.constant 0 : i32
    %c0_i32_0 = arith.constant 0 : i32
    %c0_i32_1 = arith.constant 0 : i32
    return %c0_i32, %c0_i32_0 : i32, i32
  }
  func.func @transform_2(%arg0: i32) -> (i32, i32) {
    %c0_i32 = arith.constant 0 : i32
    %c0_i32_0 = arith.constant 0 : i32
    %c0_i32_1 = arith.constant 0 : i32
    return %c0_i32, %c0_i32_0 : i32, i32
  }
  func.func @transform_3(%arg0: i32) -> (i32, i32) {
    %c0_i32 = arith.constant 0 : i32
    %c0_i32_0 = arith.constant 0 : i32
    %c0_i32_1 = arith.constant 0 : i32
    return %c0_i32, %c0_i32_0 : i32, i32
  }
  func.func @transform_4(%arg0: i32) -> (i32, i32) {
    %c0_i32 = arith.constant 0 : i32
    %c0_i32_0 = arith.constant 0 : i32
    %c0_i32_1 = arith.constant 0 : i32
    return %c0_i32, %c0_i32_0 : i32, i32
  }
  func.func @transform_5(%arg0: i32) -> (i32, i32) {
    %c0_i32 = arith.constant 0 : i32
    %c0_i32_0 = arith.constant 0 : i32
    return %arg0, %c0_i32 : i32, i32
  }
}

</mosaic_0001>

<bundles_post_ra>
// kernel: tpu_custom_call.1
= control target key start
LH: loop header
LB: loop body
LE: loop exit
PB: predicated region body
PF: predicated region fallthrough
CT: control target
= control target key end

     0   :  { %11 = vsyncpa [#allocation4], 0  ;;  %s1001_s0 = inlined_call_operand.hbm [shape: f32[2,539], index: 0, kind: input, shape index: {}]   ;;  %s1002_s1 = inlined_call_operand.hbm [shape: bf16[539,256], index: 1, kind: input, shape index: {}]   ;;  %s1003_s2 = inlined_call_operand.vmem [shape: f32[1,256], index: 2, kind: input, shape index: {}]   ;;  %s1004_s3 = inlined_call_operand.vmem [shape: f32[1,256], index: 3, kind: input, shape index: {}]   ;;  %s1005_s4 = inlined_call_operand.<no memory space> [shape: f32[1,1], index: 4, kind: input, shape index: {}]   ;;  %s1006_s5 = inlined_call_operand.vmem [shape: f32[2,1], index: 5, kind: output, shape index: {}]  }
   0x1   :  { %12 = vsyncpa [#allocation6], 0  ;;  %s910_s18 = smov [#allocation3]   ;;  %s911_s20 = smov [#allocation5]  }
   0x2   :  { %s19_s19 = sshll.u32 %s910_s18, 4  ;;  %s28_s21 = sshll.u32 %s911_s20, 4  ;;  %s20_s19 = int_to_ptr.vmem [resolvable:$true] %s19_s19  ;;  %s947_s21 = int_to_ptr.vmem [resolvable:$true] %s28_s21 }
   0x3   :  { %s862_s24 = scalar_lea.hbm %s1001_s0, 160 }
   0x4   :  { %p863_p0 = scmp.ne.s32.totalorder %s1001_s0, %s862_s24  ;;  %p866_p1 = scmp.lt.u32.totalorder %s862_s24, %s1001_s0 }
   0x6   :  { %p868_p2 = pnand %p866_p1, %p863_p0 }
   0x8   :  { %871 = shalt.err (!%p868_p2)
}
   0x9   :  { %s872_s29 = scalar_lea.vmem %s20_s19, 160  ;;  %p877_p4 = scmp.lt.s32.totalorder %s20_s19, %s20_s19 }
   0xa   :  { %p873_p3 = scmp.ne.s32.totalorder %s20_s19, %s872_s29  ;;  %p878_p5 = scmp.lt.s32.totalorder %s872_s29, %s872_s29 }
   0xc   :  { %p879_p6 = por %p878_p5, %p877_p4 }
   0xe   :  { %p880_p7 = pnand %p879_p6, %p873_p3 }
  0x10   :  { %883 = shalt.err (!%p880_p7)
}
  0x11   :  { %22 = dma.hbm_to_vmem [thread:$0]  %s1001_s0, 160, %s20_s19, [#allocation4]  }
  0x12   :  { %s884_s9 = scalar_lea.hbm %s1002_s1, 8704 }
  0x13   :  { %p885_p8 = scmp.ne.s32.totalorder %s1002_s1, %s884_s9  ;;  %p888_p9 = scmp.lt.u32.totalorder %s884_s9, %s1002_s1 }
  0x15   :  { %p890_p10 = pnand %p888_p9, %p885_p8 }
  0x17   :  { %893 = shalt.err (!%p890_p10)
}
  0x18   :  { %s894_s14 = scalar_lea.vmem %s947_s21, 8704  ;;  %p899_p12 = scmp.lt.s32.totalorder %s947_s21, %s947_s21 }
  0x19   :  { %p895_p11 = scmp.ne.s32.totalorder %s947_s21, %s894_s14  ;;  %p900_p13 = scmp.lt.s32.totalorder %s894_s14, %s894_s14 }
  0x1b   :  { %p901_p0 = por %p900_p13, %p899_p12 }
  0x1d   :  { %p902_p1 = pnand %p901_p0, %p895_p11 }
  0x1f   :  { %905 = shalt.err (!%p902_p1)
}
  0x20   :  { %s912_s0 = smov 128   ;;  %s913_s15 = smov 8  }
  0x21   :  { %34 = dma.hbm_to_vmem [thread:$0]  %s1002_s1, 8704, %s947_s21, [#allocation6], %s912_s0, %s912_s0, %s913_s15  }
  0x22   :  { %906 = dma.done.wait [#allocation4], 160  }
  0x23   :  { %907 = vsyncadd [#allocation4], 4294967136 }
  0x24   :  { %908 = dma.done.wait [#allocation6], 8704  }
  0x25   :  { %909 = vsyncadd [#allocation6], 4294958592  ;;  %v759_v0 = vld [vmem:[#allocation5 + $0x104] ss:$8 sps:$4 sm:$0xff]   ;;  %v761_v1 = vld [vmem:[#allocation5 + $0x100] ss:$8 sps:$4 sm:$0xff]   ;;  %v56_v37 = vlaneseq }
  0x26   :  { %559 = vmatprep.subr.bf16.mxu0 %v759_v0  ;;  %v762_v2 = vld [vmem:[#allocation5 + $0x114] ss:$8 sps:$4 sm:$0xff]   ;;  %v764_v3 = vld [vmem:[#allocation5 + $0x110] ss:$8 sps:$4 sm:$0xff]   ;;  %v765_v4 = vld [vmem:[#allocation5 + $0x4] ss:$8 sps:$4 sm:$0xff]  }
  0x27   :  { %560 = vmatpush1.bf16.msra.mxu0 %v761_v1  ;;  %v767_v5 = vld [vmem:[#allocation5 + $0x124] ss:$8 sps:$4 sm:$0xff]   ;;  %v769_v6 = vld [vmem:[#allocation5] ss:$8 sps:$4 sm:$0xff]   ;;  %518 = vmatprep.subr.bf16.mxu1 %v765_v4  ;;  %v771_v7 = vld [vmem:[#allocation5 + $0x14] ss:$8 sps:$4 sm:$0xff]  }
  0x28   :  { %561 = vmatprep.subr.bf16.mxu0 %v762_v2  ;;  %519 = vmatpush1.bf16.msra.mxu1 %v769_v6  ;;  %v770_v8 = vld [vmem:[#allocation5 + $0x120] ss:$8 sps:$4 sm:$0xff]   ;;  %v773_v9 = vld [vmem:[#allocation5 + $0x134] ss:$8 sps:$4 sm:$0xff]   ;;  %v775_v10 = vld [vmem:[#allocation5 + $0x10] ss:$8 sps:$4 sm:$0xff]  }
  0x29   :  { %520 = vmatprep.subr.bf16.mxu1 %v771_v7  ;;  %v777_v11 = vld [vmem:[#allocation5 + $0x24] ss:$8 sps:$4 sm:$0xff]   ;;  %v776_v12 = vld [vmem:[#allocation5 + $0x130] ss:$8 sps:$4 sm:$0xff]   ;;  %v781_v13 = vld [vmem:[#allocation5 + $0x20] ss:$8 sps:$4 sm:$0xff]  }
  0x2a   :  { %v783_v14 = vld [vmem:[#allocation5 + $0x34] ss:$8 sps:$4 sm:$0xff]   ;;  %v779_v15 = vld [vmem:[#allocation5 + $0x144] ss:$8 sps:$4 sm:$0xff]   ;;  %v787_v16 = vld [vmem:[#allocation5 + $0x30] ss:$8 sps:$4 sm:$0xff]  }
  0x2b   :  { %562 = vmatpush1.bf16.msra.mxu0 %v764_v3  ;;  %v782_v17 = vld [vmem:[#allocation5 + $0x140] ss:$8 sps:$4 sm:$0xff]   ;;  %v789_v18 = vld [vmem:[#allocation5 + $0x44] ss:$8 sps:$4 sm:$0xff]   ;;  %v785_v19 = vld [vmem:[#allocation5 + $0x154] ss:$8 sps:$4 sm:$0xff]  }
  0x2c   :  { %563 = vmatprep.subr.bf16.mxu0 %v767_v5  ;;  %521 = vmatpush1.bf16.msra.mxu1 %v775_v10  ;;  %v788_v20 = vld [vmem:[#allocation5 + $0x150] ss:$8 sps:$4 sm:$0xff]   ;;  %v793_v21 = vld [vmem:[#allocation5 + $0x40] ss:$8 sps:$4 sm:$0xff]   ;;  %v795_v22 = vld [vmem:[#allocation5 + $0x54] ss:$8 sps:$4 sm:$0xff]  }
  0x2d   :  { %522 = vmatprep.subr.bf16.mxu1 %v777_v11  ;;  %v791_v23 = vld [vmem:[#allocation5 + $0x164] ss:$8 sps:$4 sm:$0xff]   ;;  %v799_v24 = vld [vmem:[#allocation5 + $0x50] ss:$8 sps:$4 sm:$0xff]   ;;  %v794_v25 = vld [vmem:[#allocation5 + $0x160] ss:$8 sps:$4 sm:$0xff]  }
  0x2e   :  { %v801_v26 = vld [vmem:[#allocation5 + $0x64] ss:$8 sps:$4 sm:$0xff]   ;;  %v797_v27 = vld [vmem:[#allocation5 + $0x174] ss:$8 sps:$4 sm:$0xff]   ;;  %v800_v28 = vld [vmem:[#allocation5 + $0x170] ss:$8 sps:$4 sm:$0xff]  }
  0x2f   :  { %564 = vmatpush1.bf16.msra.mxu0 %v770_v8  ;;  %v805_v29 = vld [vmem:[#allocation5 + $0x60] ss:$8 sps:$4 sm:$0xff]   ;;  %v807_v30 = vld [vmem:[#allocation5 + $0x74] ss:$8 sps:$4 sm:$0xff]   ;;  %v803_v31 = vld [vmem:[#allocation5 + $0x184] ss:$8 sps:$4 sm:$0xff]  }
  0x30   :  { %565 = vmatprep.subr.bf16.mxu0 %v773_v9  ;;  %523 = vmatpush1.bf16.msra.mxu1 %v781_v13  ;;  %v811_v32 = vld [vmem:[#allocation5 + $0x70] ss:$8 sps:$4 sm:$0xff]   ;;  %v806_v33 = vld [vmem:[#allocation5 + $0x180] ss:$8 sps:$4 sm:$0xff]   ;;  %v813_v34 = vld [vmem:[#allocation5 + $0x84] ss:$8 sps:$4 sm:$0xff]  }
  0x31   :  { %524 = vmatprep.subr.bf16.mxu1 %v783_v14  ;;  %v914_v35 = vmov 1983009808   ;;  %v809_v38 = vld [vmem:[#allocation5 + $0x194] ss:$8 sps:$4 sm:$0xff]   ;;  %v812_v39 = vld [vmem:[#allocation5 + $0x190] ss:$8 sps:$4 sm:$0xff]  }
  0x32   :  { %v54_v36 = vunpack.c.l.s4 %v914_v35  ;;  %v817_v40 = vld [vmem:[#allocation5 + $0x80] ss:$8 sps:$4 sm:$0xff]   ;;  %v819_v41 = vld [vmem:[#allocation5 + $0x94] ss:$8 sps:$4 sm:$0xff]   ;;  %v978_v43 = vshrl.u32 %v56_v37, 7  ;;  %vm508_vm0 = vcmask 1044480  }
  0x33   :  { %566 = vmatpush1.bf16.msra.mxu0 %v776_v12  ;;  %v815_v44 = vld [vmem:[#allocation5 + $0x1a4] ss:$8 sps:$4 sm:$0xff]   ;;  %v823_v45 = vld [vmem:[#allocation5 + $0x90] ss:$8 sps:$4 sm:$0xff]   ;;  %v818_v46 = vld [vmem:[#allocation5 + $0x1a0] ss:$8 sps:$4 sm:$0xff]  }
  0x34   :  { %567 = vmatprep.subr.bf16.mxu0 %v779_v15  ;;  %525 = vmatpush1.bf16.msra.mxu1 %v787_v16  ;;  %v55_v42 = vunpack.c.0.s8 %v54_v36  ;;  %v821_v47 = vld [vmem:[#allocation5 + $0x1b4] ss:$8 sps:$4 sm:$0xff]   ;;  %v825_v48 = vld [vmem:[#allocation5 + $0xa4] ss:$8 sps:$4 sm:$0xff]   ;;  %v824_v53 = vld [vmem:[#allocation5 + $0x1b0] ss:$8 sps:$4 sm:$0xff]  }
  0x35   :  { %526 = vmatprep.subr.bf16.mxu1 %v789_v18  ;;  %v48_v50 = vld [vmem:[#allocation3] sm:$0xff]  ;;  %v829_v54 = vld [vmem:[#allocation5 + $0xa0] ss:$8 sps:$4 sm:$0xff]   ;;  %v827_v58 = vld [vmem:[#allocation5 + $0x1c4] ss:$8 sps:$4 sm:$0xff]   ;;  %vm509_vm1 = vcmask 1045504  }
  0x36   :  { %v58_v49 = vsub.s32 %v55_v42, %v978_v43  ;;  %v52_v51 = vcombine.high %v48_v50, %v48_v50  ;;  %v831_v55 = vld [vmem:[#allocation5 + $0xb4] ss:$8 sps:$4 sm:$0xff]   ;;  %v835_v61 = vld [vmem:[#allocation5 + $0xb0] ss:$8 sps:$4 sm:$0xff]   ;;  %v830_v62 = vld [vmem:[#allocation5 + $0x1c0] ss:$8 sps:$4 sm:$0xff]  }
  0x37   :  { %568 = vmatpush1.bf16.msra.mxu0 %v782_v17  ;;  %v837_v63 = vld [vmem:[#allocation5 + $0xc4] ss:$8 sps:$4 sm:$0xff]   ;;  %v833_v1 = vld [vmem:[#allocation5 + $0x1d4] ss:$8 sps:$4 sm:$0xff]   ;;  %v841_v2 = vld [vmem:[#allocation5 + $0xc0] ss:$8 sps:$4 sm:$0xff]  }
  0x38   :  { %569 = vmatprep.subr.bf16.mxu0 %v785_v19  ;;  %527 = vmatpush1.bf16.msra.mxu1 %v793_v21  ;;  %v981_v52 = vrot.slane %v48_v50, %v58_v49  ;;  %v66_v56 = vrot.slane %v52_v51, %v58_v49  ;;  %v836_v3 = vld [vmem:[#allocation5 + $0x1d0] ss:$8 sps:$4 sm:$0xff]   ;;  %v843_v4 = vld [vmem:[#allocation5 + $0xd4] ss:$8 sps:$4 sm:$0xff]   ;;  %v839_v5 = vld [vmem:[#allocation5 + $0x1e4] ss:$8 sps:$4 sm:$0xff]  }
  0x39   :  { %528 = vmatprep.subr.bf16.mxu1 %v795_v22  ;;  %v847_v6 = vld [vmem:[#allocation5 + $0xd0] ss:$8 sps:$4 sm:$0xff]   ;;  %v842_v7 = vld [vmem:[#allocation5 + $0x1e0] ss:$8 sps:$4 sm:$0xff]   ;;  %v850_v8 = vld [vmem:[#allocation5 + $0xe4] ss:$8 sps:$4 sm:$0xff]  }
  0x3a   :  { %v67_v57 = vcombine.high %v981_v52, %v981_v52  ;;  %v68_v59 = vcombine.high %v66_v56, %v66_v56  ;;  %v845_v9 = vld [vmem:[#allocation5 + $0x1f4] ss:$8 sps:$4 sm:$0xff]   ;;  %v855_v10 = vld [vmem:[#allocation5 + $0xe0] ss:$8 sps:$4 sm:$0xff]   ;;  %v915_v11 = vmov 65535   ;;  %v83_v18 = vpack.c.bf16 %v66_v56, %v66_v56 }
  0x3b   :  { %570 = vmatpush1.bf16.msra.mxu0 %v788_v20  ;;  %v510_v12 = vsel %vm508_vm0, 4294967295, %v915_v11  ;;  %v848_v13 = vld [vmem:[#allocation5 + $0x1f0] ss:$8 sps:$4 sm:$0xff]   ;;  %v856_v14 = vld [vmem:[#allocation5 + $0xf4] ss:$8 sps:$4 sm:$0xff]   ;;  %vm504_vm2 = vcmask 220160  }
  0x3c   :  { %571 = vmatprep.subr.bf16.mxu0 %v791_v23  ;;  %529 = vmatpush1.bf16.msra.mxu1 %v799_v24  ;;  %v82_v60 = vpack.c.bf16 %v67_v57, %v67_v57  ;;  %v84_v0 = vpack.c.bf16 %v68_v59, %v68_v59  ;;  %v854_v15 = vld [vmem:[#allocation5 + $0x204] ss:$8 sps:$4 sm:$0xff]   ;;  %v861_v16 = vld [vmem:[#allocation5 + $0x214] ss:$8 sps:$4 sm:$0x3f]   ;;  %v511_v17 = vsel %vm509_vm1, %v510_v12, 0  ;;  %v81_v23 = vpack.c.bf16 %v981_v52, %v981_v52 }
  0x3d   :  { %530 = vmatprep.subr.bf16.mxu1 %v801_v26  ;;  %v858_v19 = vld [vmem:[#allocation5 + $0xf0] ss:$8 sps:$4 sm:$0xff]   ;;  %v852_v20 = vld [vmem:[#allocation5 + $0x200] ss:$8 sps:$4 sm:$0xff]   ;;  %v516_v22 = vand.u32 %v861_v16, %v511_v17  ;;  %vm657_vm3 = vcmask 1041408   ;;  %vm666_vm4 = vcmask 1024  }
  0x3e   :  { %550 = vmatprep.mubr.bf16.mxu1 %v82_v60  ;;  %591 = vmatprep.mubr.bf16.mxu0 %v84_v0  ;;  %v859_v21 = vld [vmem:[#allocation5 + $0x210] ss:$8 sps:$4 sm:$0x3f]  }
  0x3f   :  { %572 = vmatpush1.bf16.msra.mxu0 %v794_v25  ;;  %v513_v24 = vand.u32 %v859_v21, %v511_v17  ;;  %v916_v25 = vmov 0   ;;  %v674_v26 = vld.sshfl [vmem:[#allocation3 + $0x8] sm:$0x3 pattern:$0x76325410] }
  0x40   :  { %573 = vmatprep.subr.bf16.mxu0 %v797_v27  ;;  %531 = vmatpush1.bf16.msra.mxu1 %v805_v29  ;;  %v85_v27 = vpack.c.bf16 %v674_v26, %v674_v26  ;;  %v154_v29 = vld [vmem:[%s1003_s2] sm:$0x3] }
  0x41   :  { %532 = vmatprep.subr.bf16.mxu1 %v807_v30  ;;  %v162_v30 = vsub.s32 1, %v978_v43 }
  0x43   :  { %574 = vmatpush1.bf16.msra.mxu0 %v800_v28  ;;  %v158_v28 = vsub.s32 0, %v978_v43  ;;  %v163_v35 = vrot.slane %v154_v29, %v162_v30 }
  0x44   :  { %575 = vmatprep.subr.bf16.mxu0 %v803_v31  ;;  %533 = vmatpush1.bf16.msra.mxu1 %v811_v32 }
  0x45   :  { %534 = vmatprep.subr.bf16.mxu1 %v813_v34 }
  0x47   :  { %576 = vmatpush1.bf16.msra.mxu0 %v806_v33  ;;  %v159_v33 = vrot.slane %v154_v29, %v158_v28 }
  0x48   :  { %577 = vmatprep.subr.bf16.mxu0 %v809_v38  ;;  %535 = vmatpush1.bf16.msra.mxu1 %v817_v40 }
  0x49   :  { %536 = vmatprep.subr.bf16.mxu1 %v819_v41 }
  0x4b   :  { %578 = vmatpush1.bf16.msra.mxu0 %v812_v39  ;;  %v643_v39 = vld [vmem:[%s1004_s3] sm:$0x3] }
  0x4c   :  { %579 = vmatprep.subr.bf16.mxu0 %v815_v44  ;;  %537 = vmatpush1.bf16.msra.mxu1 %v823_v45  ;;  %v648_v44 = vrot.slane %v643_v39, %v158_v28 }
  0x4d   :  { %538 = vmatprep.subr.bf16.mxu1 %v825_v48 }
  0x4f   :  { %580 = vmatpush1.bf16.msra.mxu0 %v818_v46 }
  0x50   :  { %581 = vmatprep.subr.bf16.mxu0 %v821_v47  ;;  %539 = vmatpush1.bf16.msra.mxu1 %v829_v54  ;;  %v652_v47 = vrot.slane %v643_v39, %v162_v30 }
  0x51   :  { %540 = vmatprep.subr.bf16.mxu1 %v831_v55  ;;  %v664_v55 = vstv %s1005_s4 }
  0x53   :  { %582 = vmatpush1.bf16.msra.mxu0 %v824_v53 }
  0x54   :  { %583 = vmatprep.subr.bf16.mxu0 %v827_v58  ;;  %541 = vmatpush1.bf16.msra.mxu1 %v835_v61 }
  0x55   :  { %542 = vmatprep.subr.bf16.mxu1 %v837_v63 }
  0x57   :  { %584 = vmatpush1.bf16.msra.mxu0 %v830_v62 }
  0x58   :  { %585 = vmatprep.subr.bf16.mxu0 %v833_v1  ;;  %543 = vmatpush1.bf16.msra.mxu1 %v841_v2 }
  0x59   :  { %544 = vmatprep.subr.bf16.mxu1 %v843_v4 }
  0x5b   :  { %586 = vmatpush1.bf16.msra.mxu0 %v836_v3 }
  0x5c   :  { %587 = vmatprep.subr.bf16.mxu0 %v839_v5  ;;  %545 = vmatpush1.bf16.msra.mxu1 %v847_v6 }
  0x5d   :  { %546 = vmatprep.subr.bf16.mxu1 %v850_v8 }
  0x5f   :  { %588 = vmatpush1.bf16.msra.mxu0 %v842_v7 }
  0x60   :  { %589 = vmatprep.subr.bf16.mxu0 %v845_v9  ;;  %547 = vmatpush1.bf16.msra.mxu1 %v855_v10 }
  0x61   :  { %548 = vmatprep.subr.bf16.mxu1 %v856_v14 }
  0x63   :  { %590 = vmatpush1.bf16.msra.mxu0 %v848_v13 }
  0x64   :  { %600 = vmatprep.subr.bf16.mxu0 %v854_v15  ;;  %549 = vmatpush1.bf16.msra.mxu1 %v858_v19 }
  0x66   :  { %592 = vmatmul.mubr.bf16.vlgmr.msra.gmra.mrb[0].mxu0 %v83_v18 }
  0x67   :  { %601 = vmatpush1.bf16.msra.mxu0 %v852_v20  ;;  %632 = vmatprep.mubr.bf16.mxu0 %v916_v25 }
  0x68   :  { %602 = vmatprep.subr.bf16.mxu0 %v516_v22  ;;  %551 = vmatmul.mubr.bf16.vlgmr.msra.gmra.mrb[0].mxu1 %v81_v23 }
  0x6b   :  { %603 = vmatpush1.bf16.msra.mxu0 %v513_v24 }
  0x72   :  { %743 = vmatmul.mubr.msk.bf16.vlgmr.msra.gmra.mrb[0].mxu0 %vm504_vm2, %v85_v27 }
 0x13b   :  { %v552_v31 = vpop.f32.mrb[0].mxu1 }
 0x13c   :  { %v554_v32 = vpop.f32.mrb[1].mxu1  ;;  %v553_v37 = vadd.f32 %v552_v31, %v159_v33 }
 0x13d   :  { %v556_v34 = vpop.f32.mrb[2].mxu1  ;;  %v555_v38 = vadd.f32 %v554_v32, %v163_v35 }
 0x13e   :  { %v557_v36 = vpop.f32.mrb[3].mxu1 }
 0x145   :  { %v634_v40 = vpop.f32.mrb[0].mxu0 }
 0x146   :  { %v745_v41 = vadd.f32 %v634_v40, %v553_v37  ;;  %v636_v42 = vpop.f32.mrb[1].mxu0 }
 0x147   :  { %v747_v45 = vadd.f32 %v636_v42, %v555_v38  ;;  %v638_v46 = vpop.f32.mrb[2].mxu0 }
 0x148   :  { %v641_v43 = vmax.f32 %v745_v41, 0.0  ;;  %v639_v48 = vpop.f32.mrb[3].mxu0 }
 0x149   :  { %v642_v49 = vmax.f32 %v747_v45, 0.0 }
 0x14a   :  { %v655_v50 = vmul.f32 %v648_v44, %v641_v43 }
 0x14b   :  { %v656_v51 = vmul.f32 %v652_v47, %v642_v49 }
 0x14c   :  { %v658_v52 = vsel %vm657_vm3, %v655_v50, 0.0 }
 0x14d   :  { %v659_v53 = vsel %vm657_vm3, %v656_v51, 0.0 }
 0x14e   :  { %v660_v54 = vadd.f32 %v659_v53, %v658_v52 }
 0x150   :  { %661 = vadd.xlane.f32.xlu0 %v660_v54 }
 0x1dd   :  { %v662_v56 = vpop.xlane.xlu0 %661 }
 0x1de   :  { %v665_v57 = vadd.f32 %v664_v55, %v662_v56 }
 0x1e0   :  { %667 = vst.msk [vmem:[%s1006_s5] sm:$0x3] %vm666_vm4, %v665_v57 }
 0x1e1   :  { %672 = vsyncpa [#allocation4], 1 }
 0x1e2   :  { %673 = vsyncpa [#allocation6], 1 }

</bundles_post_ra>
